<compile_context>
chip_gen: v7x
topology: tpu7x:2x2x1
jax: 0.10.0
libtpu: 0.0.40
codegen_flags: <defaults>
</compile_context>

<pallas_src>
import jax
import jax.numpy as jnp
import numpy as np
from jax.experimental import pallas as pl
from jax.experimental.pallas import tpu as pltpu

# ---------------- problem sizes (module defaults, small spatial) -------------
C = 64            # channels (module default)
R = 2             # reduction ratio
CM = C // R       # inter_channels = 32
N = 2             # batch
H = W = 8         # spatial
P = H * W         # pixels per image = 64
EPS = 1e-5        # BatchNorm eps


# =============================== Pallas kernel ================================

def iaff_kernel(x_ref, r_ref, pool_ref, bcast_ref,
                w1_ref, b1_ref, w2_ref, b2_ref, o_ref):
    """Fully fused iAFF forward, lane-dense (C, N*P) internal layout.

    x_ref, r_ref : (N, C, P) f32   free reshapes of NCHW
    pool_ref     : (N*P, N)  bf16  columns of 1/P -> per-batch mean pooling
    bcast_ref    : (N, N*P)  bf16  one-hot rows  -> per-batch broadcast
    w1_ref       : (2, 2*CM, C) bf16   [W1_local^T ; W1_global^T] per stage (BN folded)
    b1_ref       : (2, 2*CM, 1) f32
    w2_ref       : (2, C, 2*CM) bf16   [W2_local^T | W2_global^T] per stage (BN folded)
    b2_ref       : (2, C, 1)    f32    b2_local + b2_global
    o_ref        : (N, C, P) f32
    """
    nb, c, p = x_ref.shape
    cm = w1_ref.shape[1] // 2

    # Pack the batches into lane halves: (C, N*P) = (64, 128), lane-dense.
    x = jnp.concatenate([x_ref[b] for b in range(nb)], axis=1)
    r = jnp.concatenate([r_ref[b] for b in range(nb)], axis=1)
    pool_mat = pool_ref[...]       # (N*P, N) bf16
    bcast_mat = bcast_ref[...]     # (N, N*P) bf16

    def stage(act, s):
        # One bf16 cast of the activation slab, reused by the combined first conv.
        act_bf = act.astype(jnp.bfloat16)                                   # (C, NP)
        # Combined local+global first conv (+folded BN bias); rows [:cm]=local, [cm:]=global.
        hh = jnp.dot(w1_ref[s], act_bf,
                     preferred_element_type=jnp.float32) + b1_ref[s]        # (2CM, NP) f32
        h_loc = jnp.maximum(hh[:cm], 0.0)                                   # (CM, NP)
        # Global branch: per-batch mean pool of the (affine) conv output, then ReLU.
        g_pool = jnp.dot(hh[cm:].astype(jnp.bfloat16), pool_mat,
                         preferred_element_type=jnp.float32)                # (CM, N)
        h_glb = jnp.maximum(g_pool, 0.0)
        h_glb_full = jnp.dot(h_glb.astype(jnp.bfloat16), bcast_mat,
                             preferred_element_type=jnp.float32)            # (CM, NP)
        # Combined second conv fuses xl + xg (and both folded biases) in one dot.
        h_cat = jnp.concatenate([h_loc, h_glb_full], axis=0).astype(jnp.bfloat16)
        pre = jnp.dot(w2_ref[s], h_cat,
                      preferred_element_type=jnp.float32) + b2_ref[s]       # (C, NP) f32
        return jax.nn.sigmoid(pre)                                          # f32 elementwise

    # ---- stage 1: wei = sigmoid(local_att(xa) + global_att(xa)) -------------
    d = x - r                              # reused: xa, xi and final blend
    wei = stage(x + r, 0)
    dw = d * wei
    xi = r + dw                            # == x*wei + r*(1-wei)

    # ---- stage 2: wei2 = mean(sigmoid(local_att2(xi) + global_att2(xi))) ----
    s2 = stage(xi, 1)
    # torch.mean(torch.mean(.)) over the WHOLE tensor -> one batch-global scalar.
    wei2 = jnp.sum(s2, keepdims=True) * (1.0 / float(s2.shape[0] * s2.shape[1]))

    # ---- final blend: xo = xi*wei2 + residual*(1-wei2) = r + d*wei*wei2 ------
    xo = r + dw * wei2                     # (C, NP) f32
    for b in range(nb):                    # unpack lane halves back to (N, C, P)
        o_ref[b] = xo[:, b * p:(b + 1) * p]


# =============================== host wrapper =================================

def _pool_bcast_mats(n, p):
    """Per-batch mean-pool / broadcast as tiny bf16 matmul operands (bf16-exact)."""
    seg = jnp.repeat(jnp.arange(n, dtype=jnp.int32), p)                 # (n*p,)
    onehot = (seg[:, None] == jnp.arange(n, dtype=jnp.int32)[None, :])  # (n*p, n)
    pool_mat = (onehot.astype(jnp.float32) / float(p)).astype(jnp.bfloat16)  # (n*p, n)
    bcast_mat = onehot.T.astype(jnp.bfloat16)                           # (n, n*p)
    return pool_mat, bcast_mat


@jax.jit
def iaff_forward(x, residual, stacked):
    """x, residual: NCHW f32 with matching channel counts (`self.same` path: TODO)."""
    n, c, h, w = x.shape
    p = h * w
    x3 = x.reshape(n, c, p)            # no-copy reshape of NCHW
    r3 = residual.reshape(n, c, p)
    pool_mat, bcast_mat = _pool_bcast_mats(n, p)
    w1s, b1s, w2s, b2s = stacked

    cm = w1s.shape[1] // 2
    npx = n * p
    flops = 2 * (2 * (2 * cm) * c * npx        # combined first conv
                 + 2 * cm * npx * n            # pool
                 + 2 * cm * n * npx            # broadcast
                 + 2 * c * (2 * cm) * npx)     # combined second conv
    flops += 12 * c * npx                      # elementwise chain
    bytes_accessed = (3 * n * c * p * 4
                      + w1s.size * 2 + w2s.size * 2
                      + (b1s.size + b2s.size) * 4
                      + pool_mat.size * 2 + bcast_mat.size * 2)

    out3 = pl.pallas_call(
        iaff_kernel,
        out_shape=jax.ShapeDtypeStruct((n, c, p), jnp.float32),
        # Whole arrays, VMEM-resident, single invocation (no grid).
        in_specs=[pl.BlockSpec(memory_space=pltpu.MemorySpace.VMEM)] * 8,
        out_specs=pl.BlockSpec(memory_space=pltpu.MemorySpace.VMEM),
        cost_estimate=pl.CostEstimate(flops=int(flops),
                                      transcendentals=int(2 * c * npx),
                                      bytes_accessed=int(bytes_accessed)),
    )(x3, r3, pool_mat, bcast_mat, w1s, b1s, w2s, b2s)

    return out3.reshape(n, c, h, w)    # no-copy reshape back to NCHW


# =============================== parameters ===================================

def fold_conv_bn(wm, b, gamma, beta, mean, var):
    s = gamma / jnp.sqrt(var + EPS)
    return wm * s[None, :], (b - mean) * s + beta


def make_branch(key):
    """Deterministic params for one (conv1x1, BN, ReLU, conv1x1, BN) branch, BN folded (f32)."""
    k = jax.random.split(key, 12)
    w1 = jax.random.normal(k[0], (C, CM), jnp.float32) * 0.15
    b1 = jax.random.normal(k[1], (CM,), jnp.float32) * 0.05
    bn1 = (jax.random.uniform(k[2], (CM,), jnp.float32, minval=0.5, maxval=1.5),
           jax.random.normal(k[3], (CM,), jnp.float32) * 0.05,
           jax.random.normal(k[4], (CM,), jnp.float32) * 0.05,
           jax.random.uniform(k[5], (CM,), jnp.float32, minval=0.5, maxval=1.5))
    w2 = jax.random.normal(k[6], (CM, C), jnp.float32) * 0.15
    b2 = jax.random.normal(k[7], (C,), jnp.float32) * 0.05
    bn2 = (jax.random.uniform(k[8], (C,), jnp.float32, minval=0.5, maxval=1.5),
           jax.random.normal(k[9], (C,), jnp.float32) * 0.05,
           jax.random.normal(k[10], (C,), jnp.float32) * 0.05,
           jax.random.uniform(k[11], (C,), jnp.float32, minval=0.5, maxval=1.5))
    w1f, b1f = fold_conv_bn(w1, b1, *bn1)
    w2f, b2f = fold_conv_bn(w2, b2, *bn2)
    return (w1f, b1f, w2f, b2f)        # (C,CM), (CM,), (CM,C), (C,)


def stack_branches(branches):
    """Pack (local1, global1, local2, global2) into the kernel's stacked layout.

    Per stage: W1 of local/global stacked along output channels (sublanes of the
    combined first dot), W2 concatenated along the contraction dim (combined second
    dot), b2 summed (the xl+xg add is fused into the dot).  Matmul weights -> bf16.
    """
    l1, g1, l2, g2 = branches

    def stage_pack(loc, glb):
        w1l, b1l, w2l, b2l = loc
        w1g, b1g, w2g, b2g = glb
        w1t = jnp.concatenate([w1l.T, w1g.T], axis=0)            # (2CM, C)
        b1 = jnp.concatenate([b1l, b1g]).reshape(-1, 1)          # (2CM, 1)
        w2t = jnp.concatenate([w2l.T, w2g.T], axis=1)            # (C, 2CM)
        b2 = (b2l + b2g).reshape(-1, 1)                          # (C, 1)
        return w1t, b1, w2t, b2

    s1 = stage_pack(l1, g1)
    s2 = stage_pack(l2, g2)
    w1s = jnp.stack([s1[0], s2[0]]).astype(jnp.bfloat16)         # (2, 2CM, C)
    b1s = jnp.stack([s1[1], s2[1]])                              # (2, 2CM, 1) f32
    w2s = jnp.stack([s1[2], s2[2]]).astype(jnp.bfloat16)         # (2, C, 2CM)
    b2s = jnp.stack([s1[3], s2[3]])                              # (2, C, 1)  f32
    return w1s, b1s, w2s, b2s


# =============================== reference (pure JAX, f32) =====================

def _mlp_ref(x, w1, b1, w2, b2):
    h = jnp.maximum(x @ w1 + b1, 0.0)
    return h @ w2 + b2


def iaff_reference(x, residual, params):
    n, c, h, w = x.shape
    x3 = jnp.transpose(x, (0, 2, 3, 1)).reshape(n, h * w, c)
    r3 = jnp.transpose(residual, (0, 2, 3, 1)).reshape(n, h * w, c)
    local1, global1, local2, global2 = params

    xa = x3 + r3
    xl = _mlp_ref(xa, *local1)
    xg = _mlp_ref(jnp.mean(xa, axis=1), *global1)[:, None, :]
    wei = jax.nn.sigmoid(xl + xg)
    xi = x3 * wei + r3 * (1.0 - wei)
    xl2 = _mlp_ref(xi, *local2)
    xg2 = _mlp_ref(jnp.mean(xi, axis=1), *global2)[:, None, :]
    wei2 = jnp.mean(jax.nn.sigmoid(xl2 + xg2))
    xo3 = xi * wei2 + r3 * (1.0 - wei2)
    return jnp.transpose(xo3.reshape(n, h, w, c), (0, 3, 1, 2))


# =============================== main =========================================

if __name__ == "__main__":
    key = jax.random.PRNGKey(0)
    kx, kr, kl1, kg1, kl2, kg2 = jax.random.split(key, 6)
    x = jax.random.normal(kx, (N, C, H, W), jnp.float32)
    residual = jax.random.normal(kr, (N, C, H, W), jnp.float32)
    branches = (make_branch(kl1), make_branch(kg1),
                make_branch(kl2), make_branch(kg2))
    stacked = stack_branches(branches)

    out = jax.block_until_ready(iaff_forward(x, residual, stacked))
    ref = iaff_reference(x, residual, branches)

    assert out.shape == (N, C, H, W)
    # bf16 matmul inputs (f32 accumulation) vs. an all-f32 reference -> loosened tolerance.
    assert np.allclose(np.asarray(out), np.asarray(ref), atol=3e-2, rtol=2e-2), \
        "Pallas iAFF output mismatch vs JAX reference"
    print("KERNEL_OK")
</pallas_src>

<mosaic_0001>
module attributes {stable_mosaic.version = 11 : i64} {
  func.func @iaff_kernel(%arg0: memref<2x64x64xf32, #tpu.memory_space<vmem>>, %arg1: memref<2x64x64xf32, #tpu.memory_space<vmem>>, %arg2: memref<128x2xbf16, #tpu.memory_space<vmem>>, %arg3: memref<2x128xbf16, #tpu.memory_space<vmem>>, %arg4: memref<2x64x64xbf16, #tpu.memory_space<vmem>>, %arg5: memref<2x64x1xf32, #tpu.memory_space<vmem>>, %arg6: memref<2x64x64xbf16, #tpu.memory_space<vmem>>, %arg7: memref<2x64x1xf32, #tpu.memory_space<vmem>>, %arg8: memref<2x64x64xf32, #tpu.memory_space<vmem>>) attributes {dimension_semantics = [], scalar_prefetch = 0 : i64, scratch_operands = 0 : i64, tpu.core_type = #tpu.core_type<tc>} {
    %c0 = arith.constant 0 : index
    %c0_0 = arith.constant 0 : index
    %c0_1 = arith.constant 0 : index
    %0 = vector.load %arg0[%c0, %c0_0, %c0_1] : memref<2x64x64xf32, #tpu.memory_space<vmem>>, vector<1x64x64xf32>
    %1 = vector.shape_cast %0 : vector<1x64x64xf32> to vector<64x64xf32>
    %c1 = arith.constant 1 : index
    %c0_2 = arith.constant 0 : index
    %c0_3 = arith.constant 0 : index
    %2 = vector.load %arg0[%c1, %c0_2, %c0_3] : memref<2x64x64xf32, #tpu.memory_space<vmem>>, vector<1x64x64xf32>
    %3 = vector.shape_cast %2 : vector<1x64x64xf32> to vector<64x64xf32>
    %4 = tpu.concatenate %1, %3 in 1 : vector<64x64xf32>, vector<64x64xf32> -> vector<64x128xf32>
    %c0_4 = arith.constant 0 : index
    %c0_5 = arith.constant 0 : index
    %c0_6 = arith.constant 0 : index
    %5 = vector.load %arg1[%c0_4, %c0_5, %c0_6] : memref<2x64x64xf32, #tpu.memory_space<vmem>>, vector<1x64x64xf32>
    %6 = vector.shape_cast %5 : vector<1x64x64xf32> to vector<64x64xf32>
    %c1_7 = arith.constant 1 : index
    %c0_8 = arith.constant 0 : index
    %c0_9 = arith.constant 0 : index
    %7 = vector.load %arg1[%c1_7, %c0_8, %c0_9] : memref<2x64x64xf32, #tpu.memory_space<vmem>>, vector<1x64x64xf32>
    %8 = vector.shape_cast %7 : vector<1x64x64xf32> to vector<64x64xf32>
    %9 = tpu.concatenate %6, %8 in 1 : vector<64x64xf32>, vector<64x64xf32> -> vector<64x128xf32>
    %c0_10 = arith.constant 0 : index
    %c0_11 = arith.constant 0 : index
    %10 = vector.load %arg2[%c0_10, %c0_11] : memref<128x2xbf16, #tpu.memory_space<vmem>>, vector<128x2xbf16>
    %c0_12 = arith.constant 0 : index
    %c0_13 = arith.constant 0 : index
    %11 = vector.load %arg3[%c0_12, %c0_13] : memref<2x128xbf16, #tpu.memory_space<vmem>>, vector<2x128xbf16>
    %12 = arith.subf %4, %9 : vector<64x128xf32>
    %13 = arith.addf %4, %9 : vector<64x128xf32>
    %14 = arith.truncf %13 : vector<64x128xf32> to vector<64x128xbf16>
    %c0_14 = arith.constant 0 : index
    %c0_15 = arith.constant 0 : index
    %c0_16 = arith.constant 0 : index
    %15 = vector.load %arg4[%c0_14, %c0_15, %c0_16] : memref<2x64x64xbf16, #tpu.memory_space<vmem>>, vector<1x64x64xbf16>
    %16 = vector.shape_cast %15 : vector<1x64x64xbf16> to vector<64x64xbf16>
    %cst = arith.constant dense<0.000000e+00> : vector<64x128xf32>
    %17 = tpu.matmul %16, %14, %cst {dimension_numbers = #tpu.dot_dimension_numbers<[1], [0], [0], [1], [0, 0, 1, 1], [], []>} : vector<64x64xbf16>, vector<64x128xbf16>, vector<64x128xf32> -> vector<64x128xf32>
    %c0_17 = arith.constant 0 : index
    %c0_18 = arith.constant 0 : index
    %c0_19 = arith.constant 0 : index
    %18 = vector.load %arg5[%c0_17, %c0_18, %c0_19] : memref<2x64x1xf32, #tpu.memory_space<vmem>>, vector<1x64x1xf32>
    %19 = vector.shape_cast %18 : vector<1x64x1xf32> to vector<64x1xf32>
    %20 = vector.broadcast %19 : vector<64x1xf32> to vector<64x128xf32>
    %21 = arith.addf %17, %20 : vector<64x128xf32>
    %22 = vector.extract_strided_slice %21 {offsets = [0, 0], sizes = [32, 128], strides = [1, 1]} : vector<64x128xf32> to vector<32x128xf32>
    %cst_20 = arith.constant 0.000000e+00 : f32
    %23 = vector.broadcast %cst_20 : f32 to vector<32x128xf32>
    %24 = arith.maximumf %22, %23 : vector<32x128xf32>
    %25 = vector.extract_strided_slice %21 {offsets = [32, 0], sizes = [32, 128], strides = [1, 1]} : vector<64x128xf32> to vector<32x128xf32>
    %26 = arith.truncf %25 : vector<32x128xf32> to vector<32x128xbf16>
    %cst_21 = arith.constant dense<0.000000e+00> : vector<32x2xf32>
    %27 = tpu.matmul %26, %10, %cst_21 {dimension_numbers = #tpu.dot_dimension_numbers<[1], [0], [0], [1], [0, 0, 1, 1], [], []>} : vector<32x128xbf16>, vector<128x2xbf16>, vector<32x2xf32> -> vector<32x2xf32>
    %cst_22 = arith.constant 0.000000e+00 : f32
    %28 = vector.broadcast %cst_22 : f32 to vector<32x2xf32>
    %29 = arith.maximumf %27, %28 : vector<32x2xf32>
    %30 = arith.truncf %29 : vector<32x2xf32> to vector<32x2xbf16>
    %cst_23 = arith.constant dense<0.000000e+00> : vector<32x128xf32>
    %31 = tpu.matmul %30, %11, %cst_23 {dimension_numbers = #tpu.dot_dimension_numbers<[1], [0], [0], [1], [0, 0, 1, 1], [], []>} : vector<32x2xbf16>, vector<2x128xbf16>, vector<32x128xf32> -> vector<32x128xf32>
    %32 = tpu.concatenate %24, %31 in 0 : vector<32x128xf32>, vector<32x128xf32> -> vector<64x128xf32>
    %33 = arith.truncf %32 : vector<64x128xf32> to vector<64x128xbf16>
    %c0_24 = arith.constant 0 : index
    %c0_25 = arith.constant 0 : index
    %c0_26 = arith.constant 0 : index
    %34 = vector.load %arg6[%c0_24, %c0_25, %c0_26] : memref<2x64x64xbf16, #tpu.memory_space<vmem>>, vector<1x64x64xbf16>
    %35 = vector.shape_cast %34 : vector<1x64x64xbf16> to vector<64x64xbf16>
    %cst_27 = arith.constant dense<0.000000e+00> : vector<64x128xf32>
    %36 = tpu.matmul %35, %33, %cst_27 {dimension_numbers = #tpu.dot_dimension_numbers<[1], [0], [0], [1], [0, 0, 1, 1], [], []>} : vector<64x64xbf16>, vector<64x128xbf16>, vector<64x128xf32> -> vector<64x128xf32>
    %c0_28 = arith.constant 0 : index
    %c0_29 = arith.constant 0 : index
    %c0_30 = arith.constant 0 : index
    %37 = vector.load %arg7[%c0_28, %c0_29, %c0_30] : memref<2x64x1xf32, #tpu.memory_space<vmem>>, vector<1x64x1xf32>
    %38 = vector.shape_cast %37 : vector<1x64x1xf32> to vector<64x1xf32>
    %39 = vector.broadcast %38 : vector<64x1xf32> to vector<64x128xf32>
    %40 = arith.addf %36, %39 : vector<64x128xf32>
    %41 = arith.negf %40 : vector<64x128xf32>
    %42 = math.exp %41 : vector<64x128xf32>
    %cst_31 = arith.constant 1.000000e+00 : f32
    %43 = vector.broadcast %cst_31 : f32 to vector<64x128xf32>
    %44 = arith.addf %43, %42 : vector<64x128xf32>
    %45 = arith.divf %43, %44 : vector<64x128xf32>
    %46 = arith.mulf %12, %45 : vector<64x128xf32>
    %47 = arith.addf %9, %46 : vector<64x128xf32>
    %48 = arith.truncf %47 : vector<64x128xf32> to vector<64x128xbf16>
    %c1_32 = arith.constant 1 : index
    %c0_33 = arith.constant 0 : index
    %c0_34 = arith.constant 0 : index
    %49 = vector.load %arg4[%c1_32, %c0_33, %c0_34] : memref<2x64x64xbf16, #tpu.memory_space<vmem>>, vector<1x64x64xbf16>
    %50 = vector.shape_cast %49 : vector<1x64x64xbf16> to vector<64x64xbf16>
    %cst_35 = arith.constant dense<0.000000e+00> : vector<64x128xf32>
    %51 = tpu.matmul %50, %48, %cst_35 {dimension_numbers = #tpu.dot_dimension_numbers<[1], [0], [0], [1], [0, 0, 1, 1], [], []>} : vector<64x64xbf16>, vector<64x128xbf16>, vector<64x128xf32> -> vector<64x128xf32>
    %c1_36 = arith.constant 1 : index
    %c0_37 = arith.constant 0 : index
    %c0_38 = arith.constant 0 : index
    %52 = vector.load %arg5[%c1_36, %c0_37, %c0_38] : memref<2x64x1xf32, #tpu.memory_space<vmem>>, vector<1x64x1xf32>
    %53 = vector.shape_cast %52 : vector<1x64x1xf32> to vector<64x1xf32>
    %54 = vector.broadcast %53 : vector<64x1xf32> to vector<64x128xf32>
    %55 = arith.addf %51, %54 : vector<64x128xf32>
    %56 = vector.extract_strided_slice %55 {offsets = [0, 0], sizes = [32, 128], strides = [1, 1]} : vector<64x128xf32> to vector<32x128xf32>
    %cst_39 = arith.constant 0.000000e+00 : f32
    %57 = vector.broadcast %cst_39 : f32 to vector<32x128xf32>
    %58 = arith.maximumf %56, %57 : vector<32x128xf32>
    %59 = vector.extract_strided_slice %55 {offsets = [32, 0], sizes = [32, 128], strides = [1, 1]} : vector<64x128xf32> to vector<32x128xf32>
    %60 = arith.truncf %59 : vector<32x128xf32> to vector<32x128xbf16>
    %cst_40 = arith.constant dense<0.000000e+00> : vector<32x2xf32>
    %61 = tpu.matmul %60, %10, %cst_40 {dimension_numbers = #tpu.dot_dimension_numbers<[1], [0], [0], [1], [0, 0, 1, 1], [], []>} : vector<32x128xbf16>, vector<128x2xbf16>, vector<32x2xf32> -> vector<32x2xf32>
    %cst_41 = arith.constant 0.000000e+00 : f32
    %62 = vector.broadcast %cst_41 : f32 to vector<32x2xf32>
    %63 = arith.maximumf %61, %62 : vector<32x2xf32>
    %64 = arith.truncf %63 : vector<32x2xf32> to vector<32x2xbf16>
    %cst_42 = arith.constant dense<0.000000e+00> : vector<32x128xf32>
    %65 = tpu.matmul %64, %11, %cst_42 {dimension_numbers = #tpu.dot_dimension_numbers<[1], [0], [0], [1], [0, 0, 1, 1], [], []>} : vector<32x2xbf16>, vector<2x128xbf16>, vector<32x128xf32> -> vector<32x128xf32>
    %66 = tpu.concatenate %58, %65 in 0 : vector<32x128xf32>, vector<32x128xf32> -> vector<64x128xf32>
    %67 = arith.truncf %66 : vector<64x128xf32> to vector<64x128xbf16>
    %c1_43 = arith.constant 1 : index
    %c0_44 = arith.constant 0 : index
    %c0_45 = arith.constant 0 : index
    %68 = vector.load %arg6[%c1_43, %c0_44, %c0_45] : memref<2x64x64xbf16, #tpu.memory_space<vmem>>, vector<1x64x64xbf16>
    %69 = vector.shape_cast %68 : vector<1x64x64xbf16> to vector<64x64xbf16>
    %cst_46 = arith.constant dense<0.000000e+00> : vector<64x128xf32>
    %70 = tpu.matmul %69, %67, %cst_46 {dimension_numbers = #tpu.dot_dimension_numbers<[1], [0], [0], [1], [0, 0, 1, 1], [], []>} : vector<64x64xbf16>, vector<64x128xbf16>, vector<64x128xf32> -> vector<64x128xf32>
    %c1_47 = arith.constant 1 : index
    %c0_48 = arith.constant 0 : index
    %c0_49 = arith.constant 0 : index
    %71 = vector.load %arg7[%c1_47, %c0_48, %c0_49] : memref<2x64x1xf32, #tpu.memory_space<vmem>>, vector<1x64x1xf32>
    %72 = vector.shape_cast %71 : vector<1x64x1xf32> to vector<64x1xf32>
    %73 = vector.broadcast %72 : vector<64x1xf32> to vector<64x128xf32>
    %74 = arith.addf %70, %73 : vector<64x128xf32>
    %75 = arith.negf %74 : vector<64x128xf32>
    %76 = math.exp %75 : vector<64x128xf32>
    %cst_50 = arith.constant 1.000000e+00 : f32
    %77 = vector.broadcast %cst_50 : f32 to vector<64x128xf32>
    %78 = arith.addf %77, %76 : vector<64x128xf32>
    %79 = arith.divf %77, %78 : vector<64x128xf32>
    %80 = vector.shape_cast %79 : vector<64x128xf32> to vector<1x64x128xf32>
    %cst_51 = arith.constant dense<0.000000e+00> : vector<1xf32>
    %81 = vector.multi_reduction <add>, %80, %cst_51 [1, 2] : vector<1x64x128xf32> to vector<1xf32>
    %82 = vector.shape_cast %81 : vector<1xf32> to vector<1x1x1xf32>
    %83 = vector.extract %82[0, 0, 0] : f32 from vector<1x1x1xf32>
    %84 = vector.broadcast %83 : f32 to vector<1x1xf32>
    %cst_52 = arith.constant 1.22070313E-4 : f32
    %85 = vector.broadcast %cst_52 : f32 to vector<1x1xf32>
    %86 = arith.mulf %84, %85 : vector<1x1xf32>
    %87 = vector.broadcast %86 : vector<1x1xf32> to vector<64x128xf32>
    %88 = arith.mulf %46, %87 : vector<64x128xf32>
    %89 = arith.addf %9, %88 : vector<64x128xf32>
    %90 = vector.extract_strided_slice %89 {offsets = [0, 0], sizes = [64, 64], strides = [1, 1]} : vector<64x128xf32> to vector<64x64xf32>
    %c0_53 = arith.constant 0 : index
    %c0_54 = arith.constant 0 : index
    %c0_55 = arith.constant 0 : index
    %91 = vector.load %arg8[%c0_53, %c0_54, %c0_55] : memref<2x64x64xf32, #tpu.memory_space<vmem>>, vector<1x64x64xf32>
    %92 = vector.shape_cast %91 : vector<1x64x64xf32> to vector<64x64xf32>
    %93 = vector.shape_cast %90 : vector<64x64xf32> to vector<1x64x64xf32>
    tpu.vector_store %arg8[%c0_53, %c0_54, %c0_55], %93 {strides = array<i32>} : memref<2x64x64xf32, #tpu.memory_space<vmem>>, vector<1x64x64xf32>,
    %94 = vector.extract_strided_slice %89 {offsets = [0, 64], sizes = [64, 64], strides = [1, 1]} : vector<64x128xf32> to vector<64x64xf32>
    %c1_56 = arith.constant 1 : index
    %c0_57 = arith.constant 0 : index
    %c0_58 = arith.constant 0 : index
    %95 = vector.load %arg8[%c1_56, %c0_57, %c0_58] : memref<2x64x64xf32, #tpu.memory_space<vmem>>, vector<1x64x64xf32>
    %96 = vector.shape_cast %95 : vector<1x64x64xf32> to vector<64x64xf32>
    %97 = vector.shape_cast %94 : vector<64x64xf32> to vector<1x64x64xf32>
    tpu.vector_store %arg8[%c1_56, %c0_57, %c0_58], %97 {strides = array<i32>} : memref<2x64x64xf32, #tpu.memory_space<vmem>>, vector<1x64x64xf32>,
    return
  }
}

</mosaic_0001>

<bundles_post_ra>
// kernel: eq.8
= control target key start
LH: loop header
LB: loop body
LE: loop exit
PB: predicated region body
PF: predicated region fallthrough
CT: control target
= control target key end

     0   :  { %vm7_vm0 = vcmask 523264   ;;  %vm13_vm1 = vcmask 1048064   ;;  %s39_s0 = inlined_call_operand.vmem [shape: s32[2,64], index: 0, kind: input, shape index: {}]   ;;  %s40_s1 = inlined_call_operand.vmem [shape: s32[128], index: 1, kind: output, shape index: {}]  }
   0x1   :  { %v4_v0 = vld [vmem:[%s39_s0] sm:$0x3]  ;;  %s22_s0 = smov 64  }
   0x2   :  { %5 = vst [vmem:[#allocation1] sm:$0x3] %v4_v0 }
   0x9   :  { %v10_v1 = vld [vmem:[#allocation1 + $0x1] sm:$0x1]   ;;  %v6_v2 = vld [vmem:[#allocation1] sm:$0x1]  }
   0xa   :  { %11 = vrot.lane.b32.xlu0 %v10_v1, %s22_s0  ;;  %8 = vst.msk [vmem:[#allocation0] sm:$0x1] %vm7_vm0, %v6_v2  }
  0x7c   :  { %v12_v3 = vpop.permute.xlu0 %11  }
  0x7d   :  { %14 = vst.msk [vmem:[#allocation0] sm:$0x1] %vm13_vm1, %v12_v3  }
  0x84   :  { %v18_v4 = vld [vmem:[#allocation0] sm:$0x1] }
  0x85   :  { %20 = vst [vmem:[%s40_s1] sm:$0x1] %v18_v4 }

// kernel: iaff_forward.1
= control target key start
LH: loop header
LB: loop body
LE: loop exit
PB: predicated region body
PF: predicated region fallthrough
CT: control target
= control target key end

     0   :  { %s1680_s9 = smov 64   ;;  %vm79_vm0 = vcmask 523264   ;;  %v1681_v17 = vmov 0   ;;  %vm451_vm1 = vcmask 1040384   ;;  %vm444_vm2 = vcmask 15360   ;;  %s2290_s1 = inlined_call_operand.vmem [shape: f32[2,64,64], index: 1, kind: input, shape index: {}]   ;;  %s2291_s0 = inlined_call_operand.vmem [shape: f32[2,64,64], index: 0, kind: input, shape index: {}]   ;;  %s2292_s4 = inlined_call_operand.vmem [shape: bf16[2,64,64], index: 4, kind: input, shape index: {}]   ;;  %s2293_s5 = inlined_call_operand.vmem [shape: f32[2,64,1], index: 5, kind: input, shape index: {}]   ;;  %s2294_s7 = inlined_call_operand.vmem [shape: f32[2,64,1], index: 7, kind: input, shape index: {}]   ;;  %s2295_s2 = inlined_call_operand.vmem [shape: bf16[128,2], index: 2, kind: input, shape index: {}]   ;;  %s2296_s3 = inlined_call_operand.vmem [shape: bf16[2,128], index: 3, kind: input, shape index: {}]   ;;  %s2297_s6 = inlined_call_operand.vmem [shape: bf16[2,64,64], index: 6, kind: input, shape index: {}]   ;;  %s2298_s8 = inlined_call_operand.vmem [shape: f32[2,64,64], index: 8, kind: output, shape index: {}]  }
   0x1   :  { %v1302_v0 = vld [vmem:[%s2290_s1 + $0x40] sm:$0xff]  ;;  %v1303_v2 = vld [vmem:[%s2290_s1 + $0x48] sm:$0xff]  ;;  %v1297_v4 = vld [vmem:[%s2291_s0 + $0x58] sm:$0xff]  ;;  %1591 = vset.pattern.permute.xlu1 %v1681_v17  ;;  %1590 = vset.pattern.permute.xlu0 %v1681_v17 }
   0x2   :  { %v1294_v1 = vld [vmem:[%s2291_s0 + $0x40] sm:$0xff]  ;;  %113 = vrot.lane.b32.xlu1 %v1302_v0, %s1680_s9  ;;  %v1295_v3 = vld [vmem:[%s2291_s0 + $0x48] sm:$0xff]  ;;  %v1296_v5 = vld [vmem:[%s2291_s0 + $0x50] sm:$0xff] }
   0x3   :  { %55 = vrot.lane.b32.xlu0 %v1294_v1, %s1680_s9  ;;  %v1305_v6 = vld [vmem:[%s2290_s1 + $0x58] sm:$0xff]  ;;  %v1304_v7 = vld [vmem:[%s2290_s1 + $0x50] sm:$0xff]  ;;  %v1299_v8 = vld [vmem:[%s2291_s0 + $0x68] sm:$0xff] }
   0x4   :  { %v1298_v9 = vld [vmem:[%s2291_s0 + $0x60] sm:$0xff]  ;;  %v1307_v10 = vld [vmem:[%s2290_s1 + $0x68] sm:$0xff]  ;;  %v1301_v12 = vld [vmem:[%s2291_s0 + $0x78] sm:$0xff] }
   0x5   :  { %v1306_v11 = vld [vmem:[%s2290_s1 + $0x60] sm:$0xff]  ;;  %v1300_v13 = vld [vmem:[%s2291_s0 + $0x70] sm:$0xff]  ;;  %v1309_v15 = vld [vmem:[%s2290_s1 + $0x78] sm:$0xff] }
   0x6   :  { %115 = vrot.lane.b32.xlu1 %v1303_v2, %s1680_s9  ;;  %v1592_v14 = vld [vmem:[%s2292_s4] sm:$0xff]   ;;  %v1308_v16 = vld [vmem:[%s2290_s1 + $0x70] sm:$0xff]  ;;  %v195_v18 = vld [vmem:[%s2293_s5 + $0x28] sm:$0xff] }
   0x7   :  { %57 = vrot.lane.b32.xlu0 %v1295_v3, %s1680_s9  ;;  %1476 = vmatprep.mubr.msk.bf16.mxu0 %vm79_vm0, %v1592_v14  ;;  %v194_v19 = vld [vmem:[%s2293_s5 + $0x20] sm:$0xff]  ;;  %v196_v20 = vld [vmem:[%s2293_s5 + $0x30] sm:$0xff]  ;;  %v197_v21 = vld [vmem:[%s2293_s5 + $0x38] sm:$0xff] }
   0x8   :  { %v190_v22 = vld [vmem:[%s2293_s5] sm:$0xff]  ;;  %v191_v23 = vld [vmem:[%s2293_s5 + $0x8] sm:$0xff]  ;;  %v192_v24 = vld [vmem:[%s2293_s5 + $0x10] sm:$0xff] }
   0x9   :  { %v193_v25 = vld [vmem:[%s2293_s5 + $0x18] sm:$0xff]  ;;  %v516_v26 = vld [vmem:[%s2294_s7] sm:$0xff]  ;;  %v517_v27 = vld [vmem:[%s2294_s7 + $0x8] sm:$0xff] }
   0xa   :  { %61 = vrot.lane.b32.xlu1 %v1297_v4, %s1680_s9  ;;  %v518_v28 = vld [vmem:[%s2294_s7 + $0x10] sm:$0xff]  ;;  %v519_v29 = vld [vmem:[%s2294_s7 + $0x18] sm:$0xff]  ;;  %v520_v30 = vld [vmem:[%s2294_s7 + $0x20] sm:$0xff] }
   0xb   :  { %59 = vrot.lane.b32.xlu0 %v1296_v5, %s1680_s9  ;;  %v521_v31 = vld [vmem:[%s2294_s7 + $0x28] sm:$0xff]  ;;  %v522_v32 = vld [vmem:[%s2294_s7 + $0x30] sm:$0xff]  ;;  %v523_v33 = vld [vmem:[%s2294_s7 + $0x38] sm:$0xff] }
   0xc   :  { %v1356_v34 = vld [vmem:[%s2293_s5 + $0x60] sm:$0xff]  ;;  %v1357_v35 = vld [vmem:[%s2293_s5 + $0x68] sm:$0xff]  ;;  %v1358_v36 = vld [vmem:[%s2293_s5 + $0x70] sm:$0xff] }
   0xd   :  { %v1359_v37 = vld [vmem:[%s2293_s5 + $0x78] sm:$0xff]  ;;  %v1352_v38 = vld [vmem:[%s2293_s5 + $0x40] sm:$0xff]  ;;  %v1353_v39 = vld [vmem:[%s2293_s5 + $0x48] sm:$0xff] }
   0xe   :  { %119 = vrot.lane.b32.xlu1 %v1305_v6, %s1680_s9  ;;  %v1864_v40 = vld [vmem:[%s2295_s2] sm:$0xff]   ;;  %v1354_v41 = vld [vmem:[%s2293_s5 + $0x50] sm:$0xff]  ;;  %v1355_v42 = vld [vmem:[%s2293_s5 + $0x58] sm:$0xff] }
   0xf   :  { %117 = vrot.lane.b32.xlu0 %v1304_v7, %s1680_s9  ;;  %1484 = vmatprep.subr.bf16.mxu1 %v1864_v40  ;;  %v1877_v43 = vld [vmem:[%s2295_s2 + $0x8] sm:$0xff]   ;;  %v1884_v44 = vld [vmem:[%s2295_s2 + $0x10] sm:$0xff]   ;;  %v1378_v45 = vld [vmem:[%s2294_s7 + $0x40] sm:$0xff] }
  0x10   :  { %1485 = vmatpush3.bf16.msra.mxu1 %v1864_v40  ;;  %v1379_v46 = vld [vmem:[%s2294_s7 + $0x48] sm:$0xff]  ;;  %v1897_v47 = vld [vmem:[%s2295_s2 + $0x18] sm:$0xff]   ;;  %v1380_v48 = vld [vmem:[%s2294_s7 + $0x50] sm:$0xff] }
  0x11   :  { %1486 = vmatprep.subr.bf16.mxu1 %v1877_v43  ;;  %v1381_v49 = vld [vmem:[%s2294_s7 + $0x58] sm:$0xff]  ;;  %v1382_v50 = vld [vmem:[%s2294_s7 + $0x60] sm:$0xff]  ;;  %v1383_v51 = vld [vmem:[%s2294_s7 + $0x68] sm:$0xff] }
  0x12   :  { %65 = vrot.lane.b32.xlu1 %v1299_v8, %s1680_s9  ;;  %v1384_v52 = vld [vmem:[%s2294_s7 + $0x70] sm:$0xff]  ;;  %v1385_v53 = vld [vmem:[%s2294_s7 + $0x78] sm:$0xff]  ;;  %v88_v55 = vld [vmem:[%s2290_s1] sm:$0xff] }
  0x13   :  { %63 = vrot.lane.b32.xlu0 %v1298_v9, %s1680_s9  ;;  %v30_v57 = vld [vmem:[%s2291_s0] sm:$0xff]  ;;  %v89_v58 = vld [vmem:[%s2290_s1 + $0x8] sm:$0xff]  ;;  %v33_v7 = vld [vmem:[%s2291_s0 + $0x18] sm:$0xff] }
  0x14   :  { %1487 = vmatpush3.bf16.msra.mxu1 %v1877_v43  ;;  %v31_v59 = vld [vmem:[%s2291_s0 + $0x8] sm:$0xff]  ;;  %v32_v8 = vld [vmem:[%s2291_s0 + $0x10] sm:$0xff]  ;;  %v91_v9 = vld [vmem:[%s2290_s1 + $0x18] sm:$0xff] }
  0x15   :  { %1488 = vmatprep.subr.bf16.mxu1 %v1884_v44 }
  0x16   :  { %123 = vrot.lane.b32.xlu1 %v1307_v10, %s1680_s9  ;;  %v90_v10 = vld [vmem:[%s2290_s1 + $0x10] sm:$0xff] }
  0x17   :  { %121 = vrot.lane.b32.xlu0 %v1306_v11, %s1680_s9 }
  0x18   :  { %1489 = vmatpush3.bf16.msra.mxu1 %v1884_v44 }
  0x19   :  { %1490 = vmatprep.subr.bf16.mxu1 %v1897_v47 }
  0x1a   :  { %69 = vrot.lane.b32.xlu1 %v1301_v12, %s1680_s9 }
  0x1b   :  { %67 = vrot.lane.b32.xlu0 %v1300_v13, %s1680_s9 }
  0x1c   :  { %1491 = vmatpush3.bf16.msra.mxu1 %v1897_v47 }
  0x1e   :  { %127 = vrot.lane.b32.xlu1 %v1309_v15, %s1680_s9 }
  0x1f   :  { %125 = vrot.lane.b32.xlu0 %v1308_v16, %s1680_s9 }
  0x22   :  { %225 = vperm.xlu1 %1591, %v195_v18  }
  0x23   :  { %220 = vperm.xlu0 %1590, %v194_v19  }
  0x26   :  { %230 = vperm.xlu1 %1591, %v196_v20  }
  0x27   :  { %235 = vperm.xlu0 %1590, %v197_v21  }
  0x2a   :  { %200 = vperm.xlu1 %1591, %v190_v22   ;;  %v35_v22 = vld [vmem:[%s2291_s0 + $0x28] sm:$0xff] }
  0x2b   :  { %205 = vperm.xlu0 %1590, %v191_v23   ;;  %v34_v23 = vld [vmem:[%s2291_s0 + $0x20] sm:$0xff] }
  0x2e   :  { %210 = vperm.xlu1 %1591, %v192_v24   ;;  %v93_v24 = vld [vmem:[%s2290_s1 + $0x28] sm:$0xff] }
  0x2f   :  { %215 = vperm.xlu0 %1590, %v193_v25   ;;  %v92_v25 = vld [vmem:[%s2290_s1 + $0x20] sm:$0xff] }
  0x32   :  { %526 = vperm.xlu1 %1591, %v516_v26  }
  0x33   :  { %531 = vperm.xlu0 %1590, %v517_v27  }
  0x36   :  { %536 = vperm.xlu1 %1591, %v518_v28  }
  0x37   :  { %541 = vperm.xlu0 %1590, %v519_v29  }
  0x3a   :  { %546 = vperm.xlu1 %1591, %v520_v30  }
  0x3b   :  { %551 = vperm.xlu0 %1590, %v521_v31  }
  0x3e   :  { %556 = vperm.xlu1 %1591, %v522_v32  }
  0x3f   :  { %561 = vperm.xlu0 %1590, %v523_v33  }
  0x42   :  { %769 = vperm.xlu1 %1591, %v1356_v34  }
  0x43   :  { %774 = vperm.xlu0 %1590, %v1357_v35  }
  0x46   :  { %779 = vperm.xlu1 %1591, %v1358_v36  }
  0x47   :  { %784 = vperm.xlu0 %1590, %v1359_v37   ;;  %v37_v37 = vld [vmem:[%s2291_s0 + $0x38] sm:$0xff] }
  0x4a   :  { %749 = vperm.xlu1 %1591, %v1352_v38   ;;  %v36_v38 = vld [vmem:[%s2291_s0 + $0x30] sm:$0xff] }
  0x4b   :  { %754 = vperm.xlu0 %1590, %v1353_v39   ;;  %v95_v39 = vld [vmem:[%s2290_s1 + $0x38] sm:$0xff] }
  0x4e   :  { %759 = vperm.xlu1 %1591, %v1354_v41   ;;  %v94_v41 = vld [vmem:[%s2290_s1 + $0x30] sm:$0xff] }
  0x4f   :  { %764 = vperm.xlu0 %1590, %v1355_v42  }
  0x52   :  { %1024 = vperm.xlu1 %1591, %v1378_v45  }
  0x53   :  { %1029 = vperm.xlu0 %1590, %v1379_v46  }
  0x56   :  { %1034 = vperm.xlu1 %1591, %v1380_v48  }
  0x57   :  { %1039 = vperm.xlu0 %1590, %v1381_v49  }
  0x5a   :  { %1044 = vperm.xlu1 %1591, %v1382_v50  }
  0x5b   :  { %1049 = vperm.xlu0 %1590, %v1383_v51  }
  0x5e   :  { %1054 = vperm.xlu1 %1591, %v1384_v52  }
  0x5f   :  { %1059 = vperm.xlu0 %1590, %v1385_v53  }
  0x74   :  { %v114_v54 = vpop.permute.xlu1 %113 }
  0x75   :  { %v56_v56 = vpop.permute.xlu0 %55  ;;  %v1932_v60 = vsel %vm79_vm0, %v88_v55, %v114_v54  ;;  %v1593_v54 = vld [vmem:[%s2292_s4 + $0x8] sm:$0xff]   ;;  %v1594_v55 = vld [vmem:[%s2292_s4 + $0x10] sm:$0xff]  }
  0x76   :  { %v1935_v61 = vsel %vm79_vm0, %v30_v57, %v56_v56  ;;  %v1595_v56 = vld [vmem:[%s2292_s4 + $0x18] sm:$0xff]   ;;  %v2046_v57 = vld [vmem:[%s2295_s2 + $0x20] sm:$0xff]  }
  0x77   :  { %v170_v2 = vadd.f32 %v1932_v60, %v1935_v61  ;;  %1492 = vmatprep.subr.bf16.mxu1 %v2046_v57 }
  0x78   :  { %v116_v62 = vpop.permute.xlu1 %115  ;;  %1493 = vmatpush3.bf16.msra.mxu1 %v2046_v57 }
  0x79   :  { %v58_v63 = vpop.permute.xlu0 %57  ;;  %v1938_v0 = vsel %vm79_vm0, %v89_v58, %v116_v62  ;;  %v2053_v58 = vld [vmem:[%s2295_s2 + $0x28] sm:$0xff]   ;;  %v2065_v62 = vld [vmem:[%s2295_s2 + $0x30] sm:$0xff]  }
  0x7a   :  { %v1941_v1 = vsel %vm79_vm0, %v31_v59, %v58_v63  ;;  %1494 = vmatprep.subr.bf16.mxu1 %v2053_v58  ;;  %v2060_v59 = vld [vmem:[%s2296_s3] sm:$0x1] }
  0x7b   :  { %v171_v3 = vadd.f32 %v1938_v0, %v1941_v1  ;;  %v2071_v63 = vsel %vm451_vm1, %v2060_v59, 0 }
  0x7c   :  { %v62_v4 = vpop.permute.xlu1 %61  ;;  %1495 = vmatpush3.bf16.msra.mxu1 %v2053_v58 }
  0x7d   :  { %v60_v5 = vpop.permute.xlu0 %59  ;;  %v178_v6 = vpack.c.bf16 %v171_v3, %v170_v2  ;;  %v1960_v13 = vsel %vm79_vm0, %v33_v7, %v62_v4  ;;  %1496 = vmatprep.subr.bf16.mxu1 %v2065_v62  ;;  %v2079_v2 = vld [vmem:[%s2295_s2 + $0x38] sm:$0xff]  }
  0x7e   :  { %v1963_v14 = vsel %vm79_vm0, %v32_v8, %v60_v5 }
  0x7f   :  { %1468 = vmatprep.subr.bf16.mxu0 %v178_v6 }
  0x80   :  { %1469 = vmatpush3.bf16.msra.mxu0 %v178_v6  ;;  %v120_v11 = vpop.permute.xlu1 %119  ;;  %1497 = vmatpush3.bf16.msra.mxu1 %v2065_v62 }
  0x81   :  { %v118_v12 = vpop.permute.xlu0 %117  ;;  %v1966_v15 = vsel %vm79_vm0, %v91_v9, %v120_v11  ;;  %1498 = vmatprep.subr.bf16.mxu1 %v2079_v2 }
  0x82   :  { %v1969_v16 = vsel %vm79_vm0, %v90_v10, %v118_v12  ;;  %v173_v17 = vadd.f32 %v1966_v15, %v1960_v13 }
  0x83   :  { %v172_v18 = vadd.f32 %v1969_v16, %v1963_v14 }
  0x84   :  { %v66_v19 = vpop.permute.xlu1 %65  ;;  %1499 = vmatpush3.bf16.msra.mxu1 %v2079_v2 }
  0x85   :  { %v64_v20 = vpop.permute.xlu0 %63  ;;  %v179_v21 = vpack.c.bf16 %v173_v17, %v172_v18  ;;  %v1988_v28 = vsel %vm79_vm0, %v35_v22, %v66_v19 }
  0x86   :  { %v1991_v29 = vsel %vm79_vm0, %v34_v23, %v64_v20 }
  0x87   :  { %1470 = vmatprep.subr.bf16.mxu0 %v179_v21 }
  0x88   :  { %1471 = vmatpush3.bf16.msra.mxu0 %v179_v21  ;;  %v124_v26 = vpop.permute.xlu1 %123 }
  0x89   :  { %v122_v27 = vpop.permute.xlu0 %121  ;;  %v1994_v30 = vsel %vm79_vm0, %v93_v24, %v124_v26 }
  0x8a   :  { %v1997_v31 = vsel %vm79_vm0, %v92_v25, %v122_v27  ;;  %v175_v32 = vadd.f32 %v1994_v30, %v1988_v28 }
  0x8b   :  { %v174_v33 = vadd.f32 %v1997_v31, %v1991_v29 }
  0x8c   :  { %v70_v34 = vpop.permute.xlu1 %69 }
  0x8d   :  { %v68_v35 = vpop.permute.xlu0 %67  ;;  %v180_v36 = vpack.c.bf16 %v175_v32, %v174_v33  ;;  %v2016_v46 = vsel %vm79_vm0, %v37_v37, %v70_v34 }
  0x8e   :  { %v2019_v48 = vsel %vm79_vm0, %v36_v38, %v68_v35 }
  0x8f   :  { %1472 = vmatprep.subr.bf16.mxu0 %v180_v36 }
  0x90   :  { %1473 = vmatpush3.bf16.msra.mxu0 %v180_v36  ;;  %v128_v42 = vpop.permute.xlu1 %127 }
  0x91   :  { %v126_v45 = vpop.permute.xlu0 %125  ;;  %v2022_v49 = vsel %vm79_vm0, %v95_v39, %v128_v42 }
  0x92   :  { %v2025_v50 = vsel %vm79_vm0, %v94_v41, %v126_v45  ;;  %v177_v51 = vadd.f32 %v2022_v49, %v2016_v46 }
  0x93   :  { %v176_v52 = vadd.f32 %v2025_v50, %v2019_v48 }
  0x95   :  { %v181_v53 = vpack.c.bf16 %v177_v51, %v176_v52 }
  0x97   :  { %1474 = vmatprep.subr.bf16.mxu0 %v181_v53 }
  0x98   :  { %1475 = vmatpush3.bf16.msra.mxu0 %v181_v53 }
  0x99   :  { %1584 = vmatprep.subr.msk.bf16.mxu0 %vm451_vm1, %v2060_v59 }
  0x9b   :  { %1477 = vmatmul.mubr.msk.bf16.vlgmr.msra.gmra.mrb[0].mxu0 %vm79_vm0, %v1593_v54 }
  0x9c   :  { %1480 = vmatprep.mubr.msk.bf16.mxu0 %vm79_vm0, %v1594_v55  ;;  %1505 = vmatpush3.bf16.msra.mxu0 %v2071_v63 }
  0xa1   :  { %v226_v3 = vpop.permute.xlu1 %225 }
  0xa2   :  { %v221_v4 = vpop.permute.xlu0 %220 }
  0xa3   :  { %1481 = vmatmul.mubr.msk.bf16.gmra.mrb[4].mxu0 %vm79_vm0, %v1595_v56 }
  0xa5   :  { %v231_v5 = vpop.permute.xlu1 %230 }
  0xa6   :  { %v236_v6 = vpop.permute.xlu0 %235 }
  0xa9   :  { %v201_v7 = vpop.permute.xlu1 %200 }
  0xaa   :  { %v206_v8 = vpop.permute.xlu0 %205 }
  0xad   :  { %v211_v9 = vpop.permute.xlu1 %210 }
  0xae   :  { %v216_v17 = vpop.permute.xlu0 %215 }
 0x16e   :  { %v1478_v10 = vpop.f32.mrb[0].mxu0 }
 0x16f   :  { %v313_v11 = vadd.f32 %v1478_v10, %v211_v9  ;;  %v304_v12 = vpop.f32.mrb[1].mxu0 }
 0x170   :  { %v305_v18 = vadd.f32 %v304_v12, %v201_v7  ;;  %v1479_v19 = vpop.f32.mrb[2].mxu0 }
 0x171   :  { %v316_v20 = vadd.f32 %v1479_v19, %v216_v17  ;;  %v307_v21 = vpop.f32.mrb[3].mxu0  ;;  %v337_v23 = vmax.f32 %v313_v11, 0.0  ;;  %v1606_v19 = vld [vmem:[%s2297_s6 + $0x10] sm:$0xff]  }
 0x172   :  { %v308_v22 = vadd.f32 %v307_v21, %v206_v8  ;;  %v335_v25 = vmax.f32 %v305_v18, 0.0  ;;  %v1605_v18 = vld [vmem:[%s2297_s6 + $0x8] sm:$0xff]  }
 0x173   :  { %v338_v24 = vmax.f32 %v316_v20, 0.0  ;;  %v1607_v20 = vld [vmem:[%s2297_s6 + $0x18] sm:$0xff]  }
 0x174   :  { %v336_v26 = vmax.f32 %v308_v22, 0.0 }
 0x175   :  { %v505_v27 = vpack.c.bf16 %v338_v24, %v337_v23 }
 0x176   :  { %v504_v32 = vpack.c.bf16 %v336_v26, %v335_v25  ;;  %v1482_v33 = vpop.f32.mrb[4].mxu0 }
 0x177   :  { %v320_v34 = vpop.f32.mrb[5].mxu0  ;;  %v329_v36 = vadd.f32 %v1482_v33, %v231_v5 }
 0x178   :  { %v1483_v35 = vpop.f32.mrb[6].mxu0  ;;  %1510 = vmatprep.subr.bf16.mxu0 %v504_v32  ;;  %v321_v39 = vadd.f32 %v320_v34, %v221_v4 }
 0x179   :  { %v332_v37 = vadd.f32 %v1483_v35, %v236_v6  ;;  %v323_v38 = vpop.f32.mrb[7].mxu0 }
 0x17a   :  { %v324_v41 = vadd.f32 %v323_v38, %v226_v3  ;;  %v1604_v3 = vld [vmem:[%s2297_s6] sm:$0xff]  }
 0x17b   :  { %v340_v42 = vpack.c.bf16 %v332_v37, %v329_v36 }
 0x17c   :  { %v339_v45 = vpack.c.bf16 %v324_v41, %v321_v39 }
 0x17e   :  { %1500 = vmatprep.mubr.bf16.mxu1 %v339_v45 }
 0x17f   :  { %1501 = vmatmul.mubr.bf16.vlgmr.msra.gmra.mrb[0].mxu1 %v340_v42 }
 0x252   :  { %v1502_v51 = vpop.f32.mrb[0].mxu1 }
 0x253   :  { %v423_v52 = vpop.f32.mrb[1].mxu1  ;;  %v440_v54 = vmax.f32 %v1502_v51, 0.0 }
 0x254   :  { %v1503_v53 = vpop.f32.mrb[2].mxu1  ;;  %v438_v7 = vmax.f32 %v423_v52, 0.0 }
 0x255   :  { %v441_v55 = vmax.f32 %v1503_v53, 0.0  ;;  %v426_v56 = vpop.f32.mrb[3].mxu1 }
 0x256   :  { %v439_v8 = vmax.f32 %v426_v56, 0.0 }
 0x257   :  { %v443_v9 = vpack.c.bf16 %v441_v55, %v440_v54 }
 0x258   :  { %v442_v10 = vpack.c.bf16 %v439_v8, %v438_v7 }
 0x25a   :  { %1506 = vmatprep.mubr.msk.bf16.mxu0 %vm444_vm2, %v442_v10 }
 0x25b   :  { %1507 = vmatmul.mubr.msk.bf16.vlgmr.msra.gmra.mrb[8].mxu0 %vm444_vm2, %v443_v9 }
 0x25c   :  { %1511 = vmatpush3.bf16.msra.mxu0 %v504_v32  ;;  %1518 = vmatprep.mubr.msk.bf16.mxu0 %vm79_vm0, %v1604_v3 }
 0x25d   :  { %1512 = vmatprep.subr.bf16.mxu0 %v505_v27 }
 0x260   :  { %1513 = vmatpush3.bf16.msra.mxu0 %v505_v27 }
 0x32e   :  { %v1508_v4 = vpop.f32.mrb[8].mxu0 }
 0x32f   :  { %v489_v5 = vpop.f32.mrb[9].mxu0 }
 0x330   :  { %v1509_v6 = vpop.f32.mrb[10].mxu0 }
 0x331   :  { %v507_v11 = vpack.c.bf16 %v1509_v6, %v1508_v4  ;;  %v492_v12 = vpop.f32.mrb[11].mxu0 }
 0x332   :  { %v506_v17 = vpack.c.bf16 %v492_v12, %v489_v5 }
 0x334   :  { %1514 = vmatprep.subr.bf16.mxu0 %v506_v17 }
 0x335   :  { %1515 = vmatpush3.bf16.msra.mxu0 %v506_v17 }
 0x336   :  { %1516 = vmatprep.subr.bf16.mxu0 %v507_v11 }
 0x339   :  { %1517 = vmatpush3.bf16.msra.mxu0 %v507_v11 }
 0x33a   :  { %1542 = vmatprep.subr.bf16.mxu0 %v1864_v40 }
 0x33c   :  { %1519 = vmatmul.mubr.msk.bf16.vlgmr.msra.gmra.mrb[12].mxu0 %vm79_vm0, %v1605_v18 }
 0x33d   :  { %1522 = vmatprep.mubr.msk.bf16.mxu0 %vm79_vm0, %v1606_v19  ;;  %1543 = vmatpush3.bf16.msra.mxu0 %v1864_v40  ;;  %v1608_v40 = vld [vmem:[%s2292_s4 + $0x20] sm:$0xff]  }
 0x33e   :  { %1544 = vmatprep.subr.bf16.mxu0 %v1877_v43  ;;  %1534 = vmatprep.mubr.msk.bf16.mxu1 %vm79_vm0, %v1608_v40 }
 0x341   :  { %1545 = vmatpush3.bf16.msra.mxu0 %v1877_v43  ;;  %v527_v43 = vpop.permute.xlu1 %526 }
 0x342   :  { %1546 = vmatprep.subr.bf16.mxu0 %v1884_v44 }
 0x344   :  { %1523 = vmatmul.mubr.msk.bf16.gmra.mrb[16].mxu0 %vm79_vm0, %v1607_v20 }
 0x345   :  { %1547 = vmatpush3.bf16.msra.mxu0 %v1884_v44  ;;  %v532_v44 = vpop.permute.xlu0 %531 }
 0x346   :  { %1548 = vmatprep.subr.bf16.mxu0 %v1897_v47 }
 0x349   :  { %1549 = vmatpush3.bf16.msra.mxu0 %v1897_v47  ;;  %v537_v47 = vpop.permute.xlu1 %536 }
 0x34a   :  { %1550 = vmatprep.subr.bf16.mxu0 %v2046_v57 }
 0x34d   :  { %1551 = vmatpush3.bf16.msra.mxu0 %v2046_v57  ;;  %v542_v57 = vpop.permute.xlu0 %541  ;;  %v547_v23 = vpop.permute.xlu1 %546 }
 0x34e   :  { %1552 = vmatprep.subr.bf16.mxu0 %v2053_v58 }
 0x351   :  { %1553 = vmatpush3.bf16.msra.mxu0 %v2053_v58  ;;  %v557_v36 = vpop.permute.xlu1 %556 }
 0x352   :  { %1554 = vmatprep.subr.bf16.mxu0 %v2065_v62 }
 0x355   :  { %1555 = vmatpush3.bf16.msra.mxu0 %v2065_v62 }
 0x356   :  { %1556 = vmatprep.subr.bf16.mxu0 %v2079_v2 }
 0x359   :  { %1557 = vmatpush3.bf16.msra.mxu0 %v2079_v2  ;;  %v552_v2 = vpop.permute.xlu0 %551 }
 0x35d   :  { %v562_v41 = vpop.permute.xlu0 %561 }
 0x40f   :  { %v1520_v21 = vpop.f32.mrb[12].mxu0 }
 0x410   :  { %v639_v58 = vadd.f32 %v1520_v21, %v537_v47  ;;  %v630_v22 = vpop.f32.mrb[13].mxu0  ;;  %v162_v21 = vsub.f32 %v1935_v61, %v1932_v60 }
 0x411   :  { %v631_v24 = vadd.f32 %v630_v22, %v527_v43  ;;  %v1521_v62 = vpop.f32.mrb[14].mxu0  ;;  %v165_v22 = vsub.f32 %v1960_v13, %v1966_v15 }
 0x412   :  { %v1338_v25 = vmul.f32 -1.442695, %v639_v58  ;;  %v642_v26 = vadd.f32 %v1521_v62, %v542_v57  ;;  %v633_v27 = vpop.f32.mrb[15].mxu0  ;;  %v163_v62 = vsub.f32 %v1941_v1, %v1938_v0 }
 0x413   :  { %v1336_v32 = vmul.f32 -1.442695, %v631_v24  ;;  %v634_v33 = vadd.f32 %v633_v27, %v532_v44  ;;  %v164_v44 = vsub.f32 %v1963_v14, %v1969_v16 }
 0x414   :  { %1616 = vpow2.f32 %v1338_v25  ;;  %v1339_v34 = vmul.f32 -1.442695, %v642_v26 }
 0x415   :  { %1618 = vpow2.f32 %v1336_v32  ;;  %v1337_v35 = vmul.f32 -1.442695, %v634_v33  ;;  %v168_v32 = vsub.f32 %v2019_v48, %v2025_v50  ;;  %v166_v33 = vsub.f32 %v1991_v29, %v1997_v31 }
 0x416   :  { %1620 = vpow2.f32 %v1339_v34 }
 0x417   :  { %1622 = vpow2.f32 %v1337_v35  ;;  %v1524_v37 = vpop.f32.mrb[16].mxu0 }
 0x418   :  { %v655_v38 = vadd.f32 %v1524_v37, %v557_v36  ;;  %v646_v39 = vpop.f32.mrb[17].mxu0  ;;  %v169_v37 = vsub.f32 %v2016_v46, %v2022_v49 }
 0x419   :  { %v647_v42 = vadd.f32 %v646_v39, %v547_v23  ;;  %v1525_v45 = vpop.f32.mrb[18].mxu0 }
 0x41a   :  { %v1342_v51 = vmul.f32 -1.442695, %v655_v38  ;;  %v658_v52 = vadd.f32 %v1525_v45, %v562_v41  ;;  %v649_v53 = vpop.f32.mrb[19].mxu0  ;;  %v167_v41 = vsub.f32 %v1988_v28, %v1994_v30 }
 0x41b   :  { %v1340_v54 = vmul.f32 -1.442695, %v647_v42  ;;  %v650_v55 = vadd.f32 %v649_v53, %v552_v2 }
 0x41c   :  { %1624 = vpow2.f32 %v1342_v51  ;;  %v1343_v56 = vmul.f32 -1.442695, %v658_v52 }
 0x41d   :  { %1626 = vpow2.f32 %v1340_v54  ;;  %v1341_v7 = vmul.f32 -1.442695, %v650_v55 }
 0x41e   :  { %v1617_v8 = vpop.eup %1616  ;;  %1628 = vpow2.f32 %v1343_v56  ;;  %v1609_v56 = vld [vmem:[%s2292_s4 + $0x28] sm:$0xff]  }
 0x41f   :  { %v1619_v9 = vpop.eup %1618  ;;  %v687_v10 = vadd.f32 1.0, %v1617_v8  ;;  %1630 = vpow2.f32 %v1341_v7  ;;  %v1610_v7 = vld [vmem:[%s2292_s4 + $0x30] sm:$0xff]   ;;  %v1611_v8 = vld [vmem:[%s2292_s4 + $0x38] sm:$0xff]  }
 0x420   :  { %v1621_v3 = vpop.eup %1620  ;;  %v685_v4 = vadd.f32 1.0, %v1619_v9  ;;  %v770_v9 = vpop.permute.xlu1 %769 }
 0x421   :  { %v1623_v5 = vpop.eup %1622  ;;  %1632 = vrcp.f32 %v687_v10  ;;  %v688_v6 = vadd.f32 1.0, %v1621_v3  ;;  %v775_v10 = vpop.permute.xlu0 %774 }
 0x422   :  { %1634 = vrcp.f32 %v685_v4  ;;  %v686_v11 = vadd.f32 1.0, %v1623_v5 }
 0x423   :  { %1636 = vrcp.f32 %v688_v6 }
 0x424   :  { %1638 = vrcp.f32 %v686_v11  ;;  %v780_v3 = vpop.permute.xlu1 %779 }
 0x425   :  { %v785_v4 = vpop.permute.xlu0 %784 }
 0x426   :  { %v1625_v12 = vpop.eup %1624 }
 0x427   :  { %v1627_v17 = vpop.eup %1626  ;;  %v691_v18 = vadd.f32 1.0, %v1625_v12 }
 0x428   :  { %v1629_v19 = vpop.eup %1628  ;;  %v689_v20 = vadd.f32 1.0, %v1627_v17  ;;  %v750_v5 = vpop.permute.xlu1 %749 }
 0x429   :  { %v1631_v40 = vpop.eup %1630  ;;  %1640 = vrcp.f32 %v691_v18  ;;  %v692_v43 = vadd.f32 1.0, %v1629_v19  ;;  %v755_v6 = vpop.permute.xlu0 %754 }
 0x42a   :  { %1642 = vrcp.f32 %v689_v20  ;;  %v690_v47 = vadd.f32 1.0, %v1631_v40 }
 0x42b   :  { %v1633_v57 = vpop.eup %1632  ;;  %1644 = vrcp.f32 %v692_v43 }
 0x42c   :  { %v1635_v58 = vpop.eup %1634  ;;  %1646 = vrcp.f32 %v690_v47  ;;  %v2127_v23 = vmul.f32 %v1633_v57, %v164_v44  ;;  %v760_v11 = vpop.permute.xlu1 %759 }
 0x42d   :  { %v1637_v24 = vpop.eup %1636  ;;  %v2131_v25 = vmul.f32 %v1635_v58, %v162_v21  ;;  %v765_v18 = vpop.permute.xlu0 %764 }
 0x42e   :  { %v1639_v14 = vpop.eup %1638  ;;  %v2133_v26 = vmul.f32 %v1637_v24, %v165_v22  ;;  %v719_v35 = vadd.f32 %v2127_v23, %v1969_v16 }
 0x42f   :  { %v2135_v27 = vmul.f32 %v1639_v14, %v163_v62  ;;  %v717_v61 = vadd.f32 %v2131_v25, %v1932_v60 }
 0x430   :  { %v720_v2 = vadd.f32 %v2133_v26, %v1966_v15 }
 0x431   :  { %v718_v13 = vadd.f32 %v2135_v27, %v1938_v0 }
 0x432   :  { %v726_v48 = vpack.c.bf16 %v720_v2, %v719_v35 }
 0x433   :  { %v1641_v1 = vpop.eup %1640  ;;  %v725_v34 = vpack.c.bf16 %v718_v13, %v717_v61 }
 0x434   :  { %v1643_v36 = vpop.eup %1642  ;;  %v2151_v38 = vmul.f32 %v1641_v1, %v168_v32 }
 0x435   :  { %v1645_v39 = vpop.eup %1644  ;;  %1526 = vmatprep.subr.bf16.mxu1 %v725_v34  ;;  %v2155_v42 = vmul.f32 %v1643_v36, %v166_v33 }
 0x436   :  { %v1647_v45 = vpop.eup %1646  ;;  %1527 = vmatpush3.bf16.msra.mxu1 %v725_v34  ;;  %v2157_v29 = vmul.f32 %v1645_v39, %v169_v37  ;;  %v723_v54 = vadd.f32 %v2151_v38, %v2025_v50 }
 0x437   :  { %1528 = vmatprep.subr.bf16.mxu1 %v726_v48  ;;  %v2159_v51 = vmul.f32 %v1647_v45, %v167_v41  ;;  %v721_v46 = vadd.f32 %v2155_v42, %v1997_v31 }
 0x438   :  { %v724_v28 = vadd.f32 %v2157_v29, %v2022_v49 }
 0x439   :  { %v722_v52 = vadd.f32 %v2159_v51, %v1994_v30 }
 0x43a   :  { %1529 = vmatpush3.bf16.msra.mxu1 %v726_v48  ;;  %v728_v55 = vpack.c.bf16 %v724_v28, %v723_v54 }
 0x43b   :  { %v727_v53 = vpack.c.bf16 %v722_v52, %v721_v46 }
 0x43d   :  { %1530 = vmatprep.subr.bf16.mxu1 %v727_v53 }
 0x43e   :  { %1531 = vmatpush3.bf16.msra.mxu1 %v727_v53  ;;  %v1612_v53 = vld [vmem:[%s2297_s6 + $0x20] sm:$0xff]  }
 0x43f   :  { %1532 = vmatprep.subr.bf16.mxu1 %v728_v55 }
 0x442   :  { %1533 = vmatpush3.bf16.msra.mxu1 %v728_v55 }
 0x443   :  { %1585 = vmatprep.subr.msk.bf16.mxu1 %vm451_vm1, %v2060_v59 }
 0x445   :  { %1535 = vmatmul.mubr.msk.bf16.vlgmr.msra.gmra.mrb[4].mxu1 %vm79_vm0, %v1609_v56 }
 0x446   :  { %1538 = vmatprep.mubr.msk.bf16.mxu1 %vm79_vm0, %v1610_v7  ;;  %1563 = vmatpush3.bf16.msra.mxu1 %v2071_v63 }
 0x44d   :  { %1539 = vmatmul.mubr.msk.bf16.gmra.mrb[8].mxu1 %vm79_vm0, %v1611_v8 }
 0x518   :  { %v1536_v59 = vpop.f32.mrb[4].mxu1 }
 0x519   :  { %v862_v12 = vadd.f32 %v1536_v59, %v760_v11  ;;  %v853_v17 = vpop.f32.mrb[5].mxu1 }
 0x51a   :  { %v854_v19 = vadd.f32 %v853_v17, %v750_v5  ;;  %v1537_v20 = vpop.f32.mrb[6].mxu1  ;;  %v1025_v5 = vpop.permute.xlu1 %1024 }
 0x51b   :  { %v865_v63 = vadd.f32 %v1537_v20, %v765_v18  ;;  %v856_v40 = vpop.f32.mrb[7].mxu1  ;;  %v886_v44 = vmax.f32 %v862_v12, 0.0 }
 0x51c   :  { %v857_v43 = vadd.f32 %v856_v40, %v755_v6  ;;  %v884_v57 = vmax.f32 %v854_v19, 0.0  ;;  %v1030_v6 = vpop.permute.xlu0 %1029 }
 0x51d   :  { %v887_v47 = vmax.f32 %v865_v63, 0.0 }
 0x51e   :  { %v885_v21 = vmax.f32 %v857_v43, 0.0  ;;  %v1035_v11 = vpop.permute.xlu1 %1034 }
 0x51f   :  { %v1001_v58 = vpack.c.bf16 %v887_v47, %v886_v44 }
 0x520   :  { %v1000_v22 = vpack.c.bf16 %v885_v21, %v884_v57  ;;  %v1540_v24 = vpop.f32.mrb[8].mxu1  ;;  %v1040_v59 = vpop.permute.xlu0 %1039 }
 0x521   :  { %v869_v62 = vpop.f32.mrb[9].mxu1  ;;  %v878_v61 = vadd.f32 %v1540_v24, %v780_v3  ;;  %v1614_v3 = vld [vmem:[%s2297_s6 + $0x30] sm:$0xff]  }
 0x522   :  { %v1541_v14 = vpop.f32.mrb[10].mxu1  ;;  %1568 = vmatprep.subr.bf16.mxu1 %v1000_v22  ;;  %v870_v32 = vadd.f32 %v869_v62, %v770_v9  ;;  %v1045_v19 = vpop.permute.xlu1 %1044 }
 0x523   :  { %v881_v13 = vadd.f32 %v1541_v14, %v785_v4  ;;  %v872_v2 = vpop.f32.mrb[11].mxu1  ;;  %v1615_v4 = vld [vmem:[%s2297_s6 + $0x38] sm:$0xff]  }
 0x524   :  { %v873_v1 = vadd.f32 %v872_v2, %v775_v10  ;;  %v1613_v10 = vld [vmem:[%s2297_s6 + $0x28] sm:$0xff]   ;;  %v1050_v47 = vpop.permute.xlu0 %1049 }
 0x525   :  { %v889_v33 = vpack.c.bf16 %v881_v13, %v878_v61 }
 0x526   :  { %v888_v34 = vpack.c.bf16 %v873_v1, %v870_v32  ;;  %v1055_v24 = vpop.permute.xlu1 %1054 }
 0x528   :  { %1558 = vmatprep.mubr.bf16.mxu0 %v888_v34  ;;  %v1060_v13 = vpop.permute.xlu0 %1059 }
 0x529   :  { %1559 = vmatmul.mubr.bf16.vlgmr.msra.gmra.mrb[20].mxu0 %v889_v33 }
 0x5fc   :  { %v1560_v35 = vpop.f32.mrb[20].mxu0 }
 0x5fd   :  { %v924_v36 = vpop.f32.mrb[21].mxu0  ;;  %v941_v39 = vmax.f32 %v1560_v35, 0.0 }
 0x5fe   :  { %v1561_v37 = vpop.f32.mrb[22].mxu0  ;;  %v939_v45 = vmax.f32 %v924_v36, 0.0 }
 0x5ff   :  { %v942_v41 = vmax.f32 %v1561_v37, 0.0  ;;  %v927_v48 = vpop.f32.mrb[23].mxu0 }
 0x600   :  { %v940_v46 = vmax.f32 %v927_v48, 0.0 }
 0x601   :  { %v944_v52 = vpack.c.bf16 %v942_v41, %v941_v39 }
 0x602   :  { %v943_v28 = vpack.c.bf16 %v940_v46, %v939_v45 }
 0x604   :  { %1564 = vmatprep.mubr.msk.bf16.mxu1 %vm444_vm2, %v943_v28 }
 0x605   :  { %1565 = vmatmul.mubr.msk.bf16.vlgmr.msra.gmra.mrb[12].mxu1 %vm444_vm2, %v944_v52 }
 0x606   :  { %1569 = vmatpush3.bf16.msra.mxu1 %v1000_v22  ;;  %1576 = vmatprep.mubr.msk.bf16.mxu1 %vm79_vm0, %v1612_v53 }
 0x607   :  { %1570 = vmatprep.subr.bf16.mxu1 %v1001_v58 }
 0x60a   :  { %1571 = vmatpush3.bf16.msra.mxu1 %v1001_v58 }
 0x6d8   :  { %v1566_v54 = vpop.f32.mrb[12].mxu1 }
 0x6d9   :  { %v985_v55 = vpop.f32.mrb[13].mxu1 }
 0x6da   :  { %v1567_v56 = vpop.f32.mrb[14].mxu1 }
 0x6db   :  { %v1003_v7 = vpack.c.bf16 %v1567_v56, %v1566_v54  ;;  %v988_v8 = vpop.f32.mrb[15].mxu1 }
 0x6dc   :  { %v1002_v9 = vpack.c.bf16 %v988_v8, %v985_v55 }
 0x6de   :  { %1572 = vmatprep.subr.bf16.mxu1 %v1002_v9 }
 0x6df   :  { %1573 = vmatpush3.bf16.msra.mxu1 %v1002_v9 }
 0x6e0   :  { %1574 = vmatprep.subr.bf16.mxu1 %v1003_v7 }
 0x6e3   :  { %1575 = vmatpush3.bf16.msra.mxu1 %v1003_v7 }
 0x6e6   :  { %1577 = vmatmul.mubr.msk.bf16.vlgmr.msra.gmra.mrb[16].mxu1 %vm79_vm0, %v1613_v10 }
 0x6e7   :  { %1580 = vmatprep.mubr.msk.bf16.mxu1 %vm79_vm0, %v1614_v3 }
 0x6ee   :  { %1581 = vmatmul.mubr.msk.bf16.gmra.mrb[20].mxu1 %vm79_vm0, %v1615_v4 }
 0x7b9   :  { %v1578_v12 = vpop.f32.mrb[16].mxu1 }
 0x7ba   :  { %v1137_v17 = vadd.f32 %v1578_v12, %v1035_v11  ;;  %v1128_v18 = vpop.f32.mrb[17].mxu1 }
 0x7bb   :  { %v1129_v20 = vadd.f32 %v1128_v18, %v1025_v5  ;;  %v1579_v63 = vpop.f32.mrb[18].mxu1 }
 0x7bc   :  { %v1396_v40 = vmul.f32 -1.442695, %v1137_v17  ;;  %v1140_v43 = vadd.f32 %v1579_v63, %v1040_v59  ;;  %v1131_v44 = vpop.f32.mrb[19].mxu1 }
 0x7bd   :  { %v1394_v57 = vmul.f32 -1.442695, %v1129_v20  ;;  %v1132_v21 = vadd.f32 %v1131_v44, %v1030_v6 }
 0x7be   :  { %1648 = vpow2.f32 %v1396_v40  ;;  %v1397_v58 = vmul.f32 -1.442695, %v1140_v43 }
 0x7bf   :  { %1650 = vpow2.f32 %v1394_v57  ;;  %v1395_v22 = vmul.f32 -1.442695, %v1132_v21 }
 0x7c0   :  { %1652 = vpow2.f32 %v1397_v58 }
 0x7c1   :  { %1654 = vpow2.f32 %v1395_v22  ;;  %v1582_v62 = vpop.f32.mrb[20].mxu1 }
 0x7c2   :  { %v1153_v14 = vadd.f32 %v1582_v62, %v1055_v24  ;;  %v1144_v61 = vpop.f32.mrb[21].mxu1 }
 0x7c3   :  { %v1145_v2 = vadd.f32 %v1144_v61, %v1045_v19  ;;  %v1583_v32 = vpop.f32.mrb[22].mxu1 }
 0x7c4   :  { %v1400_v1 = vmul.f32 -1.442695, %v1153_v14  ;;  %v1156_v33 = vadd.f32 %v1583_v32, %v1060_v13  ;;  %v1147_v34 = vpop.f32.mrb[23].mxu1 }
 0x7c5   :  { %v1398_v35 = vmul.f32 -1.442695, %v1145_v2  ;;  %v1148_v36 = vadd.f32 %v1147_v34, %v1050_v47 }
 0x7c6   :  { %1656 = vpow2.f32 %v1400_v1  ;;  %v1401_v37 = vmul.f32 -1.442695, %v1156_v33 }
 0x7c7   :  { %1658 = vpow2.f32 %v1398_v35  ;;  %v1399_v39 = vmul.f32 -1.442695, %v1148_v36 }
 0x7c8   :  { %v1649_v41 = vpop.eup %1648  ;;  %1660 = vpow2.f32 %v1401_v37 }
 0x7c9   :  { %v1651_v48 = vpop.eup %1650  ;;  %1662 = vpow2.f32 %v1399_v39  ;;  %v1185_v28 = vadd.f32 1.0, %v1649_v41 }
 0x7ca   :  { %v1653_v45 = vpop.eup %1652  ;;  %v1183_v46 = vadd.f32 1.0, %v1651_v48 }
 0x7cb   :  { %v1655_v52 = vpop.eup %1654  ;;  %v1186_v54 = vadd.f32 1.0, %v1653_v45 }
 0x7cc   :  { %v1184_v53 = vadd.f32 1.0, %v1655_v52  ;;  %1664 = vrcp.f32 %v1183_v46 }
 0x7ce   :  { %1666 = vrcp.f32 %v1184_v53 }
 0x7cf   :  { %1668 = vrcp.f32 %v1185_v28 }
 0x7d0   :  { %v1657_v55 = vpop.eup %1656  ;;  %1670 = vrcp.f32 %v1186_v54 }
 0x7d1   :  { %v1659_v56 = vpop.eup %1658  ;;  %v1189_v10 = vadd.f32 1.0, %v1657_v55 }
 0x7d2   :  { %v1661_v7 = vpop.eup %1660  ;;  %v1187_v8 = vadd.f32 1.0, %v1659_v56 }
 0x7d3   :  { %v1663_v9 = vpop.eup %1662  ;;  %v1190_v4 = vadd.f32 1.0, %v1661_v7 }
 0x7d4   :  { %1672 = vrcp.f32 %v1187_v8  ;;  %v1188_v3 = vadd.f32 1.0, %v1663_v9 }
 0x7d6   :  { %1674 = vrcp.f32 %v1188_v3  ;;  %v1665_v5 = vpop.eup %1664 }
 0x7d7   :  { %1676 = vrcp.f32 %v1189_v10 }
 0x7d8   :  { %v1667_v6 = vpop.eup %1666  ;;  %1678 = vrcp.f32 %v1190_v4 }
 0x7d9   :  { %v1207_v11 = vadd.f32 %v1667_v6, %v1665_v5  ;;  %v1669_v59 = vpop.eup %1668 }
 0x7da   :  { %v1671_v17 = vpop.eup %1670 }
 0x7db   :  { %v1208_v12 = vadd.f32 %v1669_v59, %v1207_v11 }
 0x7dd   :  { %v1209_v18 = vadd.f32 %v1671_v17, %v1208_v12 }
 0x7de   :  { %v1673_v19 = vpop.eup %1672 }
 0x7df   :  { %v1210_v20 = vadd.f32 %v1673_v19, %v1209_v18 }
 0x7e0   :  { %v1675_v63 = vpop.eup %1674 }
 0x7e1   :  { %v1211_v40 = vadd.f32 %v1675_v63, %v1210_v20  ;;  %v1677_v43 = vpop.eup %1676 }
 0x7e2   :  { %v1679_v47 = vpop.eup %1678 }
 0x7e3   :  { %v1212_v44 = vadd.f32 %v1677_v43, %v1211_v40 }
 0x7e5   :  { %v1213_v57 = vadd.f32 %v1679_v47, %v1212_v44 }
 0x7e7   :  { %1214 = vadd.xlane.f32.xlu1 %v1213_v57 }
 0x874   :  { %v1215_v21 = vpop.xlane.xlu1 %1214 }
 0x875   :  { %v1216_v58 = vrot.slane %v1215_v21, 4 }
 0x877   :  { %v1217_v22 = vadd.f32 %v1216_v58, %v1215_v21 }
 0x879   :  { %v1218_v24 = vrot.slane %v1217_v22, 2 }
 0x87b   :  { %v1219_v62 = vadd.f32 %v1218_v24, %v1217_v22 }
 0x87d   :  { %v1220_v14 = vrot.slane %v1219_v62, 1 }
 0x87f   :  { %v1221_v61 = vadd.f32 %v1220_v14, %v1219_v62 }
 0x881   :  { %1586 = vpush %v1221_v61 }
 0x8b2   :  { %s1587_s6 = spop %1586 }
 0x8b3   :  { %v1223_v13 = vstv %s1587_s6 }
 0x8b4   :  { %v1224_v2 = vmul.f32 0.00012207031, %v1223_v13 }
 0x8b6   :  { %v1225_v32 = vmul.f32 %v1224_v2, %v2131_v25  ;;  %v1226_v1 = vmul.f32 %v1224_v2, %v2135_v27  ;;  %v1227_v33 = vmul.f32 %v1224_v2, %v2127_v23  ;;  %v1228_v34 = vmul.f32 %v1224_v2, %v2133_v26 }
 0x8b7   :  { %v1229_v35 = vmul.f32 %v1224_v2, %v2155_v42  ;;  %v1230_v36 = vmul.f32 %v1224_v2, %v2159_v51  ;;  %v1231_v37 = vmul.f32 %v1224_v2, %v2151_v38  ;;  %v1232_v39 = vmul.f32 %v1224_v2, %v2157_v29 }
 0x8b8   :  { %v1233_v41 = vadd.f32 %v1225_v32, %v1932_v60  ;;  %v1234_v48 = vadd.f32 %v1226_v1, %v1938_v0  ;;  %v1235_v25 = vadd.f32 %v1227_v33, %v1969_v16  ;;  %v1236_v27 = vadd.f32 %v1228_v34, %v1966_v15 }
 0x8b9   :  { %v1237_v23 = vadd.f32 %v1229_v35, %v1997_v31  ;;  %v1238_v26 = vadd.f32 %v1230_v36, %v1994_v30  ;;  %v1239_v42 = vadd.f32 %v1231_v37, %v2025_v50  ;;  %v1240_v51 = vadd.f32 %v1232_v39, %v2022_v49 }
 0x8ba   :  { %1257 = vrot.lane.b32.xlu0 %v1233_v41, %s1680_s9  ;;  %1241 = vst.msk [vmem:[%s2298_s8] sm:$0xff] %vm79_vm0, %v1233_v41  ;;  %1242 = vst.msk [vmem:[%s2298_s8 + $0x8] sm:$0xff] %vm79_vm0, %v1234_v48 }
 0x8bb   :  { %1243 = vst.msk [vmem:[%s2298_s8 + $0x10] sm:$0xff] %vm79_vm0, %v1235_v25  ;;  %1244 = vst.msk [vmem:[%s2298_s8 + $0x18] sm:$0xff] %vm79_vm0, %v1236_v27 }
 0x8bc   :  { %1245 = vst.msk [vmem:[%s2298_s8 + $0x20] sm:$0xff] %vm79_vm0, %v1237_v23  ;;  %1246 = vst.msk [vmem:[%s2298_s8 + $0x28] sm:$0xff] %vm79_vm0, %v1238_v26 }
 0x8bd   :  { %1247 = vst.msk [vmem:[%s2298_s8 + $0x30] sm:$0xff] %vm79_vm0, %v1239_v42  ;;  %1248 = vst.msk [vmem:[%s2298_s8 + $0x38] sm:$0xff] %vm79_vm0, %v1240_v51 }
 0x8be   :  { %1259 = vrot.lane.b32.xlu0 %v1234_v48, %s1680_s9 }
 0x8c2   :  { %1261 = vrot.lane.b32.xlu0 %v1235_v25, %s1680_s9 }
 0x8c6   :  { %1263 = vrot.lane.b32.xlu0 %v1236_v27, %s1680_s9 }
 0x8ca   :  { %1265 = vrot.lane.b32.xlu0 %v1237_v23, %s1680_s9 }
 0x8ce   :  { %1267 = vrot.lane.b32.xlu0 %v1238_v26, %s1680_s9 }
 0x8d2   :  { %1269 = vrot.lane.b32.xlu0 %v1239_v42, %s1680_s9 }
 0x8d6   :  { %1271 = vrot.lane.b32.xlu0 %v1240_v51, %s1680_s9 }
 0x92c   :  { %v1258_v60 = vpop.permute.xlu0 %1257 }
 0x92d   :  { %1402 = vst.msk [vmem:[%s2298_s8 + $0x40] sm:$0xff] %vm79_vm0, %v1258_v60 }
 0x930   :  { %v1260_v0 = vpop.permute.xlu0 %1259 }
 0x931   :  { %1403 = vst.msk [vmem:[%s2298_s8 + $0x48] sm:$0xff] %vm79_vm0, %v1260_v0 }
 0x934   :  { %v1262_v15 = vpop.permute.xlu0 %1261 }
 0x935   :  { %1404 = vst.msk [vmem:[%s2298_s8 + $0x50] sm:$0xff] %vm79_vm0, %v1262_v15 }
 0x938   :  { %v1264_v16 = vpop.permute.xlu0 %1263 }
 0x939   :  { %1405 = vst.msk [vmem:[%s2298_s8 + $0x58] sm:$0xff] %vm79_vm0, %v1264_v16 }
 0x93c   :  { %v1266_v30 = vpop.permute.xlu0 %1265 }
 0x93d   :  { %1406 = vst.msk [vmem:[%s2298_s8 + $0x60] sm:$0xff] %vm79_vm0, %v1266_v30 }
 0x940   :  { %v1268_v31 = vpop.permute.xlu0 %1267 }
 0x941   :  { %1407 = vst.msk [vmem:[%s2298_s8 + $0x68] sm:$0xff] %vm79_vm0, %v1268_v31 }
 0x944   :  { %v1270_v49 = vpop.permute.xlu0 %1269 }
 0x945   :  { %1408 = vst.msk [vmem:[%s2298_s8 + $0x70] sm:$0xff] %vm79_vm0, %v1270_v49 }
 0x948   :  { %v1272_v50 = vpop.permute.xlu0 %1271 }
 0x949   :  { %1409 = vst.msk [vmem:[%s2298_s8 + $0x78] sm:$0xff] %vm79_vm0, %v1272_v50 }

</bundles_post_ra>
